<compile_context>
chip_gen: v5e
topology: v5e:2x2
jax: 0.10.0
libtpu: 0.0.40
codegen_flags: <defaults>
</compile_context>

<pallas_src>
import functools

import jax
import jax.numpy as jnp
from jax.experimental import pallas as pl
from jax.experimental.pallas import tpu as pltpu


def _contrast_kernel(z1_ref, z2_ref, ws_ref, bs_ref, loss_ref, *, tau, n_rows):
    # Stack the two views inside the kernel (single aligned VMEM write;
    # n_rows is a multiple of 8 so the concat and the slices below are
    # sublane-aligned and copy-free).
    z = jnp.concatenate([z1_ref[...], z2_ref[...]], axis=0)        # (2N, D)

    w1 = ws_ref[0]                                                 # (D, D)
    w2 = ws_ref[1]                                                 # (D, D)
    b1 = bs_ref[0:1, :]                                            # (1, D)
    b2 = bs_ref[1:2, :]                                            # (1, D)

    # Fused two-view projection: one MLP pass over the stacked block.
    h = jnp.maximum(
        jnp.dot(z, w1, preferred_element_type=jnp.float32) + b1, 0.0)
    p = jnp.dot(h, w2, preferred_element_type=jnp.float32) + b2    # (2N, D)

    # Row normalization with 1/tau folded into the rsqrt argument (tau > 0):
    #   rsqrt((||p||^2 + eps) * tau) = rsqrt(||p||^2 + eps) * rsqrt(tau)
    # so p1n_i . p2n_j == cos(p1_i, p2_j) / tau. The 1e-12 eps only guards a
    # zero-norm projection (reference has no eps on the norms).
    sq = jnp.sum(p * p, axis=-1, keepdims=True)                    # (2N, 1)
    pn = p * jax.lax.rsqrt((sq + 1e-12) * tau)                     # (2N, D)

    p1n = pn[:n_rows]                                              # (N, D)
    p2n = pn[n_rows:]                                              # (N, D)

    # logits_ij = cos(p1_i, p2_j) / tau ; contract on the feature axis of
    # both operands -- no explicit transpose of p2 (MXU-native orientation).
    logits = jax.lax.dot_general(
        p1n, p2n, (((1,), (1,)), ((), ())),
        preferred_element_type=jnp.float32)                        # (N, N)

    # mean(logits) via the rank-1 identity:
    #   sum_{i,j} p1n_i . p2n_j = (sum_i p1n_i) . (sum_j p2n_j)
    s1 = jnp.sum(p1n, axis=0, keepdims=True)                       # (1, D)
    s2 = jnp.sum(p2n, axis=0, keepdims=True)                       # (1, D)
    mean_logits = jnp.sum(s1 * s2) / float(n_rows * n_rows)

    # Log-domain loss (exactly the reference loss, rewritten):
    #   -mean(log(exp(logits) / (row_sum + 1e-8)))
    #     = mean_i(log(row_sum_i + 1e-8)) - mean(logits)
    row_sum = jnp.sum(jnp.exp(logits), axis=1, keepdims=True)      # (N, 1)
    loss = jnp.mean(jnp.log(row_sum + 1e-8)) - mean_logits

    loss_ref[0, 0] = loss


def contrast_loss(z1, z2, w1, b1, w2, b2, tau):
    """Pallas wrapper. z1, z2: (N, D) float32; tau > 0. Returns scalar loss."""
    n, d = z1.shape
    # Stack parameters host/wrapper-side: 5 inputs -> 4 (weights/biases are
    # tiny, so this costs nothing while removing DMA/prologue overhead).
    ws = jnp.stack([w1, w2], axis=0)                               # (2, D, D)
    bs = jnp.stack([b1, b2], axis=0)                               # (2, D)

    kernel = functools.partial(_contrast_kernel, tau=float(tau), n_rows=n)
    out = pl.pallas_call(
        kernel,
        out_shape=jax.ShapeDtypeStruct((1, 1), jnp.float32),
        in_specs=[
            pl.BlockSpec(memory_space=pltpu.MemorySpace.VMEM),     # z1
            pl.BlockSpec(memory_space=pltpu.MemorySpace.VMEM),     # z2
            pl.BlockSpec(memory_space=pltpu.MemorySpace.VMEM),     # ws
            pl.BlockSpec(memory_space=pltpu.MemorySpace.VMEM),     # bs
        ],
        out_specs=pl.BlockSpec(memory_space=pltpu.MemorySpace.SMEM),
    )(z1, z2, ws, bs)
    return out[0, 0]


def _xavier_normal(key, fan_in, fan_out, gain):
    std = gain * (2.0 / (fan_in + fan_out)) ** 0.5
    return std * jax.random.normal(key, (fan_in, fan_out), dtype=jnp.float32)


def _reference(z1, z2, w1, b1, w2, b2, tau):
    def proj(z):
        h = jnp.maximum(z @ w1 + b1, 0.0)
        return h @ w2 + b2
    p1, p2 = proj(z1), proj(z2)
    n1 = jnp.linalg.norm(p1, axis=-1, keepdims=True)
    n2 = jnp.linalg.norm(p2, axis=-1, keepdims=True)
    sim = jnp.exp((p1 @ p2.T) / (n1 @ n2.T) / tau)
    mat = sim / (jnp.sum(sim, axis=1, keepdims=True) + 1e-8)
    return -jnp.mean(jnp.log(mat))


if __name__ == "__main__":
    N = 16          # number of nodes (rows)
    HIDDEN = 32     # hidden_dim
    TAU = 0.5

    key = jax.random.PRNGKey(0)
    k_z1, k_z2, k_w1, k_w2 = jax.random.split(key, 4)

    z_mp_i1 = jax.random.normal(k_z1, (N, HIDDEN), dtype=jnp.float32)
    z_mp_i2 = jax.random.normal(k_z2, (N, HIDDEN), dtype=jnp.float32)

    # Deterministic parameter init mirroring nn.init.xavier_normal_(gain=1.414),
    # biases set to zero (synthetic init, not a checkpoint load).
    w1 = _xavier_normal(k_w1, HIDDEN, HIDDEN, gain=1.414)
    b1 = jnp.zeros((HIDDEN,), dtype=jnp.float32)
    w2 = _xavier_normal(k_w2, HIDDEN, HIDDEN, gain=1.414)
    b2 = jnp.zeros((HIDDEN,), dtype=jnp.float32)

    loss = contrast_loss(z_mp_i1, z_mp_i2, w1, b1, w2, b2, TAU)
    loss = jax.block_until_ready(loss)

    ref = _reference(z_mp_i1, z_mp_i2, w1, b1, w2, b2, TAU)
    assert jnp.allclose(loss, ref, rtol=1e-4, atol=1e-4), (loss, ref)

    print("KERNEL_OK")
</pallas_src>

<mosaic_0001>
module attributes {stable_mosaic.version = 11 : i64} {
  func.func @_contrast_kernel(%arg0: memref<16x32xf32, #tpu.memory_space<vmem>>, %arg1: memref<16x32xf32, #tpu.memory_space<vmem>>, %arg2: memref<2x32x32xf32, #tpu.memory_space<vmem>>, %arg3: memref<2x32xf32, #tpu.memory_space<vmem>>, %arg4: memref<1x1xf32, #tpu.memory_space<smem>>) attributes {dimension_semantics = [], scalar_prefetch = 0 : i64, scratch_operands = 0 : i64, tpu.core_type = #tpu.core_type<tc>} {
    %c0 = arith.constant 0 : index
    %c0_0 = arith.constant 0 : index
    %0 = vector.load %arg0[%c0, %c0_0] : memref<16x32xf32, #tpu.memory_space<vmem>>, vector<16x32xf32>
    %c0_1 = arith.constant 0 : index
    %c0_2 = arith.constant 0 : index
    %1 = vector.load %arg1[%c0_1, %c0_2] : memref<16x32xf32, #tpu.memory_space<vmem>>, vector<16x32xf32>
    %2 = tpu.concatenate %0, %1 in 0 : vector<16x32xf32>, vector<16x32xf32> -> vector<32x32xf32>
    %c0_3 = arith.constant 0 : index
    %c0_4 = arith.constant 0 : index
    %c0_5 = arith.constant 0 : index
    %3 = vector.load %arg2[%c0_3, %c0_4, %c0_5] : memref<2x32x32xf32, #tpu.memory_space<vmem>>, vector<1x32x32xf32>
    %4 = vector.shape_cast %3 : vector<1x32x32xf32> to vector<32x32xf32>
    %c1 = arith.constant 1 : index
    %c0_6 = arith.constant 0 : index
    %c0_7 = arith.constant 0 : index
    %5 = vector.load %arg2[%c1, %c0_6, %c0_7] : memref<2x32x32xf32, #tpu.memory_space<vmem>>, vector<1x32x32xf32>
    %6 = vector.shape_cast %5 : vector<1x32x32xf32> to vector<32x32xf32>
    %c0_8 = arith.constant 0 : index
    %c0_9 = arith.constant 0 : index
    %7 = vector.load %arg3[%c0_8, %c0_9] : memref<2x32xf32, #tpu.memory_space<vmem>>, vector<1x32xf32>
    %c1_10 = arith.constant 1 : index
    %c0_11 = arith.constant 0 : index
    %8 = vector.load %arg3[%c1_10, %c0_11] : memref<2x32xf32, #tpu.memory_space<vmem>>, vector<1x32xf32>
    %cst = arith.constant dense<0.000000e+00> : vector<32x32xf32>
    %9 = tpu.matmul %2, %4, %cst {dimension_numbers = #tpu.dot_dimension_numbers<[1], [0], [0], [1], [0, 0, 1, 1], [], []>} : vector<32x32xf32>, vector<32x32xf32>, vector<32x32xf32> -> vector<32x32xf32>
    %10 = vector.broadcast %7 : vector<1x32xf32> to vector<32x32xf32>
    %11 = arith.addf %9, %10 : vector<32x32xf32>
    %cst_12 = arith.constant 0.000000e+00 : f32
    %12 = vector.broadcast %cst_12 : f32 to vector<32x32xf32>
    %13 = arith.maximumf %11, %12 : vector<32x32xf32>
    %cst_13 = arith.constant dense<0.000000e+00> : vector<32x32xf32>
    %14 = tpu.matmul %13, %6, %cst_13 {dimension_numbers = #tpu.dot_dimension_numbers<[1], [0], [0], [1], [0, 0, 1, 1], [], []>} : vector<32x32xf32>, vector<32x32xf32>, vector<32x32xf32> -> vector<32x32xf32>
    %15 = vector.broadcast %8 : vector<1x32xf32> to vector<32x32xf32>
    %16 = arith.addf %14, %15 : vector<32x32xf32>
    %17 = arith.mulf %16, %16 : vector<32x32xf32>
    %cst_14 = arith.constant dense<0.000000e+00> : vector<32xf32>
    %18 = vector.multi_reduction <add>, %17, %cst_14 [1] : vector<32x32xf32> to vector<32xf32>
    %19 = vector.shape_cast %18 : vector<32xf32> to vector<32x1xf32>
    %cst_15 = arith.constant 9.99999996E-13 : f32
    %20 = vector.broadcast %cst_15 : f32 to vector<32x1xf32>
    %21 = arith.addf %19, %20 : vector<32x1xf32>
    %cst_16 = arith.constant 5.000000e-01 : f32
    %22 = vector.broadcast %cst_16 : f32 to vector<32x1xf32>
    %23 = arith.mulf %21, %22 : vector<32x1xf32>
    %24 = math.rsqrt %23 : vector<32x1xf32>
    %25 = vector.broadcast %24 : vector<32x1xf32> to vector<32x32xf32>
    %26 = arith.mulf %16, %25 : vector<32x32xf32>
    %27 = vector.extract_strided_slice %26 {offsets = [0, 0], sizes = [16, 32], strides = [1, 1]} : vector<32x32xf32> to vector<16x32xf32>
    %28 = vector.extract_strided_slice %26 {offsets = [16, 0], sizes = [16, 32], strides = [1, 1]} : vector<32x32xf32> to vector<16x32xf32>
    %cst_17 = arith.constant dense<0.000000e+00> : vector<16x16xf32>
    %29 = tpu.matmul %27, %28, %cst_17 {dimension_numbers = #tpu.dot_dimension_numbers<[1], [1], [0], [0], [0, 0, 1, 0], [], []>} : vector<16x32xf32>, vector<16x32xf32>, vector<16x16xf32> -> vector<16x16xf32>
    %cst_18 = arith.constant dense<0.000000e+00> : vector<32xf32>
    %30 = vector.multi_reduction <add>, %27, %cst_18 [0] : vector<16x32xf32> to vector<32xf32>
    %31 = vector.shape_cast %30 : vector<32xf32> to vector<1x32xf32>
    %cst_19 = arith.constant dense<0.000000e+00> : vector<32xf32>
    %32 = vector.multi_reduction <add>, %28, %cst_19 [0] : vector<16x32xf32> to vector<32xf32>
    %33 = vector.shape_cast %32 : vector<32xf32> to vector<1x32xf32>
    %34 = arith.mulf %31, %33 : vector<1x32xf32>
    %35 = vector.shape_cast %34 : vector<1x32xf32> to vector<1x1x32xf32>
    %cst_20 = arith.constant dense<0.000000e+00> : vector<1xf32>
    %36 = vector.multi_reduction <add>, %35, %cst_20 [1, 2] : vector<1x1x32xf32> to vector<1xf32>
    %37 = vector.shape_cast %36 : vector<1xf32> to vector<1x1x1xf32>
    %38 = vector.extract %37[0, 0, 0] : f32 from vector<1x1x1xf32>
    %cst_21 = arith.constant 2.560000e+02 : f32
    %39 = arith.divf %38, %cst_21 : f32
    %40 = math.exp %29 : vector<16x16xf32>
    %cst_22 = arith.constant dense<0.000000e+00> : vector<16xf32>
    %41 = vector.multi_reduction <add>, %40, %cst_22 [1] : vector<16x16xf32> to vector<16xf32>
    %42 = vector.shape_cast %41 : vector<16xf32> to vector<16x1xf32>
    %cst_23 = arith.constant 9.99999993E-9 : f32
    %43 = vector.broadcast %cst_23 : f32 to vector<16x1xf32>
    %44 = arith.addf %42, %43 : vector<16x1xf32>
    %45 = math.log %44 : vector<16x1xf32>
    %46 = vector.shape_cast %45 : vector<16x1xf32> to vector<1x16x1xf32>
    %cst_24 = arith.constant dense<0.000000e+00> : vector<1xf32>
    %47 = vector.multi_reduction <add>, %46, %cst_24 [1, 2] : vector<1x16x1xf32> to vector<1xf32>
    %48 = vector.shape_cast %47 : vector<1xf32> to vector<1x1x1xf32>
    %49 = vector.extract %48[0, 0, 0] : f32 from vector<1x1x1xf32>
    %cst_25 = arith.constant 1.600000e+01 : f32
    %50 = arith.divf %49, %cst_25 : f32
    %51 = arith.subf %50, %39 : f32
    %c0_26 = arith.constant 0 : index
    %c0_27 = arith.constant 0 : index
    %52 = memref.load %arg4[%c0_26, %c0_27] : memref<1x1xf32, #tpu.memory_space<smem>>
    memref.store %51, %arg4[%c0_26, %c0_27] : memref<1x1xf32, #tpu.memory_space<smem>>
    return
  }
}

</mosaic_0001>

<bundles_post_ra>
// kernel: tpu_custom_call.1
= control target key start
LH: loop header
LB: loop body
LE: loop exit
PB: predicated region body
PF: predicated region fallthrough
CT: control target
= control target key end

     0   :  { %9 = vsyncpa [#allocation3], 0  ;;  %s594_s0 = inlined_call_operand.hbm [shape: f32[16,32], index: 0, kind: input, shape index: {}]   ;;  %s595_s1 = inlined_call_operand.hbm [shape: f32[16,32], index: 1, kind: input, shape index: {}]   ;;  %s596_s2 = inlined_call_operand.hbm [shape: f32[2,32,32], index: 2, kind: input, shape index: {}]   ;;  %s597_s3 = inlined_call_operand.vmem [shape: f32[2,32], index: 3, kind: input, shape index: {}]   ;;  %s598_s4 = inlined_call_operand.hbm [shape: f32[1,1], index: 4, kind: output, shape index: {}]  }
   0x1   :  { %10 = vsyncpa [#allocation6], 0 }
   0x2   :  { %11 = vsyncpa [#allocation4], 0  ;;  %s29_s17 = sshll.u32 %s595_s1, 4  ;;  %s518_s18 = smov [#allocation5]   ;;  %s30_s17 = int_to_ptr.hbm [resolvable:$true] %s29_s17 }
   0x3   :  { %s31_s19 = sshll.u32 %s518_s18, 4  ;;  %s16_s22 = sshll.u32 %s594_s0, 4  ;;  %s32_s19 = int_to_ptr.vmem [resolvable:$true] %s31_s19  ;;  %s17_s22 = int_to_ptr.hbm [resolvable:$true] %s16_s22 }
   0x4   :  { %s519_s23 = smov 128   ;;  %s520_s24 = smov 8  }
   0x5   :  { %37 = dma.hbm_to_vmem [thread:$0]  %s30_s17, 256, %s32_s19, [#allocation6], %s519_s23, %s519_s23, %s520_s24  }
   0x6   :  { %s521_s25 = smov [#allocation2]   ;;  %s42_s29 = sshll.u32 %s596_s2, 4  ;;  %s43_s29 = int_to_ptr.hbm [resolvable:$true] %s42_s29 }
   0x7   :  { %s18_s26 = sshll.u32 %s521_s25, 4  ;;  %s522_s1 = smov [#allocation7]   ;;  %s19_s26 = int_to_ptr.vmem [resolvable:$true] %s18_s26 }
   0x8   :  { %24 = dma.hbm_to_vmem [thread:$0]  %s17_s22, 256, %s19_s26, [#allocation3], %s519_s23, %s519_s23, %s520_s24  }
   0x9   :  { %s44_s30 = sshll.u32 %s522_s1, 4  ;;  %s45_s30 = int_to_ptr.vmem [resolvable:$true] %s44_s30 }
   0xa   :  { %50 = dma.hbm_to_vmem [thread:$0]  %s43_s29, 1024, %s45_s30, [#allocation6], %s519_s23, %s519_s23, %s520_s24  }
   0xb   :  { %512 = dma.done.wait [#allocation3], 256  }
   0xc   :  { %513 = vsyncadd [#allocation3], 4294967040 }
   0xd   :  { %514 = dma.done.wait [#allocation6], 1280  }
   0xe   :  { %515 = vsyncadd [#allocation6], 4294966016  ;;  %v72_v0 = vld [vmem:[#allocation7 + $0x18] sm:$0xff]  ;;  %v71_v1 = vld [vmem:[#allocation7 + $0x10] sm:$0xff]  ;;  %vm81_vm0 = vcmask 261120   ;;  %vm291_vm13 = vcmask 253952  }
   0xf   :  { %106 = vmatpush.msra.mxu0 %v72_v0  ;;  %382 = vmatpush.msra.mxu3 %v72_v0  ;;  %v70_v2 = vld [vmem:[#allocation7 + $0x8] sm:$0xff]  ;;  %v77_v3 = vld [vmem:[#allocation7 + $0x38] sm:$0xff]  ;;  %v69_v4 = vld [vmem:[#allocation7] sm:$0xff]  ;;  %vm315_vm14 = vcmask 130048   ;;  %s358_s11 = sshll.u32 %s598_s4, 4  ;;  %s525_s16 = smov [#allocation8]   ;;  %s359_s11 = int_to_ptr.hbm [resolvable:$true] %s358_s11 }
  0x10   :  { %386 = vmatpush.msra.mxu1 %v77_v3  ;;  %v65_v5 = vld [vmem:[#allocation2] sm:$0xff]  ;;  %v66_v6 = vld [vmem:[#allocation2 + $0x8] sm:$0xff]  ;;  %v67_v7 = vld [vmem:[#allocation5] sm:$0xff] }
  0x11   :  { %107 = vmatpush.msra.mxu0 %v71_v1  ;;  %383 = vmatpush.msra.mxu3 %v71_v1  ;;  %v68_v8 = vld [vmem:[#allocation5 + $0x8] sm:$0xff]  ;;  %v76_v9 = vld [vmem:[#allocation7 + $0x30] sm:$0xff]  ;;  %v75_v10 = vld [vmem:[#allocation7 + $0x28] sm:$0xff] }
  0x12   :  { %387 = vmatpush.msra.mxu1 %v76_v9  ;;  %v74_v11 = vld [vmem:[#allocation7 + $0x20] sm:$0xff] }
  0x13   :  { %108 = vmatpush.msra.mxu0 %v70_v2  ;;  %384 = vmatpush.msra.mxu3 %v70_v2  ;;  %v406_v12 = vld [vmem:[%s597_s3] ss:$0 sm:$0xff]  ;;  %v407_v25 = vld [vmem:[%s597_s3 + $0x1] ss:$0 sm:$0xff] }
  0x14   :  { %388 = vmatpush.msra.mxu1 %v75_v10 }
  0x15   :  { %109 = vmatpush.msra.mxu0 %v69_v4  ;;  %385 = vmatpush.msra.mxu3 %v69_v4 }
  0x16   :  { %370 = vmatmul.msk.f32.vlgmr.msra.gmra.mxu0 %vm81_vm0, %v65_v5  ;;  %371 = vmatmul.msk.f32.vlgmr.msra.gmra.mxu3 %vm81_vm0, %v66_v6 }
  0x17   :  { %152 = vmatpush.msrb.mxu0 %v77_v3  ;;  %389 = vmatpush.msra.mxu1 %v74_v11 }
  0x19   :  { %153 = vmatpush.msrb.mxu0 %v76_v9 }
  0x1b   :  { %154 = vmatpush.msrb.mxu0 %v75_v10 }
  0x1d   :  { %155 = vmatpush.msrb.mxu0 %v74_v11 }
  0x1e   :  { %372 = vmatmul.msk.f32.gmra.mxu3 %vm81_vm0, %v67_v7 }
  0x26   :  { %373 = vmatmul.msk.f32.gmra.mxu3 %vm81_vm0, %v68_v8 }
  0x93   :  { %v111_v13 = vpop.f32.mrf.mxu0 }
  0x94   :  { %v112_v14 = vadd.f32 %v406_v12, %v111_v13 }
  0x96   :  { %v123_v15 = vmax.f32 %v112_v14, 0.0 }
  0x98   :  { %374 = vmatmul.msk.f32.vlgmr.msrb.gmra.mxu0 %vm81_vm0, %v123_v15 }
  0x99   :  { %v114_v16 = vpop.f32.mrf.mxu3 }
  0x9a   :  { %v115_v17 = vadd.f32 %v406_v12, %v114_v16 }
  0x9c   :  { %v124_v18 = vmax.f32 %v115_v17, 0.0 }
  0x9e   :  { %375 = vmatmul.msk.f32.vlgmr.msra.gmra.mxu1 %vm81_vm0, %v124_v18 }
  0xa1   :  { %v117_v19 = vpop.f32.mrf.mxu3 }
  0xa2   :  { %v118_v20 = vadd.f32 %v406_v12, %v117_v19 }
  0xa4   :  { %v125_v21 = vmax.f32 %v118_v20, 0.0 }
  0xa6   :  { %376 = vmatmul.msk.f32.gmra.mxu1 %vm81_vm0, %v125_v21 }
  0xa9   :  { %v120_v22 = vpop.f32.mrf.mxu3 }
  0xaa   :  { %v121_v23 = vadd.f32 %v406_v12, %v120_v22 }
  0xac   :  { %v126_v24 = vmax.f32 %v121_v23, 0.0 }
  0xae   :  { %377 = vmatmul.msk.f32.gmra.mxu1 %vm81_vm0, %v126_v24 }
 0x115   :  { %v157_v26 = vpop.f32.mrf.mxu0 }
 0x116   :  { %v158_v27 = vadd.f32 %v407_v25, %v157_v26 }
 0x118   :  { %v169_v28 = vmul.f32 %v158_v27, %v158_v27 }
 0x11a   :  { %v173_v29 = vsel %vm81_vm0, %v169_v28, 0.0 }
 0x11b   :  { %v160_v30 = vpop.f32.mrf.mxu1  ;;  %174 = vadd.xlane.f32.xlu1 %v173_v29 }
 0x11c   :  { %v161_v31 = vadd.f32 %v407_v25, %v160_v30 }
 0x11e   :  { %v170_v32 = vmul.f32 %v161_v31, %v161_v31 }
 0x120   :  { %v176_v33 = vsel %vm81_vm0, %v170_v32, 0.0 }
 0x123   :  { %v163_v34 = vpop.f32.mrf.mxu1  ;;  %177 = vadd.xlane.f32.xlu1 %v176_v33 }
 0x124   :  { %v576_v38 = vadd.f32 %v407_v25, %v163_v34 }
 0x126   :  { %v171_v40 = vmul.f32 %v576_v38, %v576_v38 }
 0x128   :  { %v179_v41 = vsel %vm81_vm0, %v171_v40, 0.0 }
 0x12b   :  { %v166_v35 = vpop.f32.mrf.mxu1 }
 0x12c   :  { %v167_v36 = vadd.f32 %v407_v25, %v166_v35 }
 0x12e   :  { %v172_v37 = vmul.f32 %v167_v36, %v167_v36 }
 0x130   :  { %v182_v39 = vsel %vm81_vm0, %v172_v37, 0.0 }
 0x131   :  { %183 = vadd.xlane.f32.xlu0 %v182_v39 }
 0x139   :  { %180 = vadd.xlane.f32.xlu0 %v179_v41 }
 0x18e   :  { %v175_v42 = vpop.xlane.xlu1 %174 }
 0x18f   :  { %v185_v43 = vadd.f32 1e-12, %v175_v42  ;;  %v523_v42 = vmov 256.0  }
 0x191   :  { %v189_v44 = vmul.f32 0.5, %v185_v43 }
 0x193   :  { %408 = vrsqrt.f32 %v189_v44  ;;  %vm199_vm1 = vweird.f32 %v189_v44 }
 0x196   :  { %v178_v45 = vpop.xlane.xlu1 %177 }
 0x197   :  { %v186_v46 = vadd.f32 1e-12, %v178_v45 }
 0x199   :  { %v190_v47 = vmul.f32 0.5, %v186_v46  ;;  %v409_v48 = vpop.eup %408 }
 0x19a   :  { %v194_v49 = vmul.f32 %v409_v48, %v189_v44  ;;  %vm200_vm2 = vweird.f32 %v409_v48 }
 0x19b   :  { %410 = vrsqrt.f32 %v190_v47  ;;  %vm201_vm4 = vmor %vm199_vm1, %vm200_vm2  ;;  %vm209_vm5 = vweird.f32 %v190_v47 }
 0x19c   :  { %v195_v51 = vmul.f32 %v409_v48, %v194_v49 }
 0x19e   :  { %v196_v56 = vmul.f32 0.5, %v195_v51 }
 0x1a0   :  { %v197_v60 = vsub.f32 1.5, %v196_v56 }
 0x1a1   :  { %v411_v50 = vpop.eup %410 }
 0x1a2   :  { %v204_v52 = vmul.f32 %v411_v50, %v190_v47  ;;  %vm210_vm3 = vweird.f32 %v411_v50  ;;  %v198_v0 = vmul.f32 %v409_v48, %v197_v60 }
 0x1a3   :  { %vm211_vm6 = vmor %vm209_vm5, %vm210_vm3 }
 0x1a4   :  { %v205_v53 = vmul.f32 %v411_v50, %v204_v52  ;;  %v184_v54 = vpop.xlane.xlu0 %183  ;;  %v202_v6 = vsel %vm201_vm4, %v409_v48, %v198_v0 }
 0x1a5   :  { %v188_v55 = vadd.f32 1e-12, %v184_v54  ;;  %v233_v9 = vmul.f32 %v202_v6, %v158_v27 }
 0x1a6   :  { %v206_v57 = vmul.f32 0.5, %v205_v53 }
 0x1a7   :  { %v192_v58 = vmul.f32 0.5, %v188_v55  ;;  %v272_v15 = vsel %vm81_vm0, %v233_v9, 0.0 }
 0x1a8   :  { %v207_v59 = vsub.f32 1.5, %v206_v57 }
 0x1a9   :  { %412 = vrsqrt.f32 %v192_v58  ;;  %vm229_vm8 = vweird.f32 %v192_v58 }
 0x1aa   :  { %v208_v62 = vmul.f32 %v411_v50, %v207_v59 }
 0x1ac   :  { %v181_v61 = vpop.xlane.xlu0 %180  ;;  %v212_v4 = vsel %vm211_vm6, %v411_v50, %v208_v62 }
 0x1ad   :  { %v187_v63 = vadd.f32 1e-12, %v181_v61  ;;  %v234_v7 = vmul.f32 %v212_v4, %v161_v31 }
 0x1af   :  { %v413_v1 = vpop.eup %412  ;;  %v191_v2 = vmul.f32 0.5, %v187_v63  ;;  %v273_v12 = vsel %vm81_vm0, %v234_v7, 0.0 }
 0x1b0   :  { %v224_v3 = vmul.f32 %v413_v1, %v192_v58  ;;  %vm230_vm7 = vweird.f32 %v413_v1  ;;  %v274_v18 = vadd.f32 %v273_v12, %v272_v15 }
 0x1b1   :  { %414 = vrsqrt.f32 %v191_v2  ;;  %vm231_vm9 = vmor %vm229_vm8, %vm230_vm7  ;;  %vm219_vm11 = vweird.f32 %v191_v2 }
 0x1b2   :  { %v225_v5 = vmul.f32 %v413_v1, %v224_v3  ;;  %v275_v22 = vrot.slane %v274_v18, 4  ;;  %416 = vrcp.f32 %v523_v42 }
 0x1b4   :  { %v226_v8 = vmul.f32 0.5, %v225_v5  ;;  %v276_v25 = vadd.f32 %v275_v22, %v274_v18 }
 0x1b6   :  { %v227_v10 = vsub.f32 1.5, %v226_v8  ;;  %v277_v30 = vrot.slane %v276_v25, 2 }
 0x1b7   :  { %v415_v11 = vpop.eup %414 }
 0x1b8   :  { %v214_v13 = vmul.f32 %v415_v11, %v191_v2  ;;  %v228_v14 = vmul.f32 %v413_v1, %v227_v10  ;;  %vm220_vm10 = vweird.f32 %v415_v11  ;;  %v278_v32 = vadd.f32 %v277_v30, %v276_v25  ;;  %v417_v43 = vpop.eup %416 }
 0x1b9   :  { %vm221_vm12 = vmor %vm219_vm11, %vm220_vm10  ;;  %v303_v44 = vmul.f32 256.0, %v417_v43  ;;  %vm307_vm15 = vweird.f32 %v417_v43 }
 0x1ba   :  { %v215_v16 = vmul.f32 %v415_v11, %v214_v13  ;;  %v232_v17 = vsel %vm231_vm9, %v413_v1, %v228_v14  ;;  %v279_v35 = vrot.slane %v278_v32, 1 }
 0x1bb   :  { %v236_v19 = vmul.f32 %v232_v17, %v167_v36  ;;  %v304_v45 = vsub.f32 1.0, %v303_v44 }
 0x1bc   :  { %v216_v20 = vmul.f32 0.5, %v215_v16 }
 0x1bd   :  { %378 = vmatpush.xpose.msk.msra.mxu2 %vm81_vm0, %v236_v19  ;;  %v282_v27 = vsel %vm81_vm0, %v236_v19, 0.0  ;;  %v305_v51 = vmul.f32 %v417_v43, %v304_v45 }
 0x1be   :  { %v217_v21 = vsub.f32 1.5, %v216_v20 }
 0x1bf   :  { %v306_v54 = vadd.f32 %v417_v43, %v305_v51 }
 0x1c0   :  { %v218_v23 = vmul.f32 %v415_v11, %v217_v21 }
 0x1c1   :  { %v308_v61 = vsel %vm307_vm15, %v417_v43, %v306_v54 }
 0x1c2   :  { %v222_v24 = vsel %vm221_vm12, %v415_v11, %v218_v23  ;;  %v524_v11 = vmov 16.0  }
 0x1c3   :  { %v235_v26 = vmul.f32 %v222_v24, %v576_v38  ;;  %v280_v38 = vadd.f32 %v279_v35, %v278_v32 }
 0x1c5   :  { %379 = vmatpush.xpose.msk.msra.mxu2 %vm81_vm0, %v235_v26  ;;  %v281_v28 = vsel %vm81_vm0, %v235_v26, 0.0 }
 0x1c6   :  { %v283_v29 = vadd.f32 %v282_v27, %v281_v28 }
 0x1c8   :  { %v284_v31 = vrot.slane %v283_v29, 4  ;;  %380 = vmatmul.msk.f32.vlgmr.msra.gmra.mxu2 %vm81_vm0, %v233_v9 }
 0x1ca   :  { %v285_v33 = vadd.f32 %v284_v31, %v283_v29 }
 0x1cc   :  { %v286_v34 = vrot.slane %v285_v33, 2 }
 0x1ce   :  { %v287_v36 = vadd.f32 %v286_v34, %v285_v33 }
 0x1d0   :  { %381 = vmatmul.msk.f32.gmra.mxu2 %vm81_vm0, %v234_v7  ;;  %v288_v37 = vrot.slane %v287_v36, 1  ;;  %vm328_vm0 = vcmask 7168  }
 0x1d2   :  { %v289_v39 = vadd.f32 %v288_v37, %v287_v36 }
 0x1d4   :  { %v290_v40 = vmul.f32 %v289_v39, %v280_v38 }
 0x1d6   :  { %v292_v41 = vsel %vm291_vm13, %v290_v40, 0.0 }
 0x1d7   :  { %293 = vadd.xlane.f32.xlu0 %v292_v41 }
 0x24a   :  { %v294_v46 = vpop.xlane.xlu0 %293 }
 0x24b   :  { %v295_v47 = vrot.slane %v294_v46, 4  ;;  %v266_v48 = vpop.f32.mrf.mxu2 }
 0x24c   :  { %v311_v49 = vmul.f32 1.442695, %v266_v48 }
 0x24d   :  { %v296_v50 = vadd.f32 %v295_v47, %v294_v46 }
 0x24e   :  { %418 = vpow2.f32 %v311_v49 }
 0x24f   :  { %v297_v52 = vrot.slane %v296_v50, 2 }
 0x251   :  { %v298_v53 = vadd.f32 %v297_v52, %v296_v50 }
 0x253   :  { %v269_v55 = vpop.f32.mrf.mxu2  ;;  %v299_v56 = vrot.slane %v298_v53, 1 }
 0x254   :  { %v419_v57 = vpop.eup %418  ;;  %v313_v58 = vmul.f32 1.442695, %v269_v55 }
 0x255   :  { %v316_v59 = vsel %vm315_vm14, %v419_v57, 0.0  ;;  %v300_v60 = vadd.f32 %v299_v56, %v298_v53 }
 0x256   :  { %420 = vpow2.f32 %v313_v58  ;;  %317 = vadd.xlane.f32.xlu2 %v316_v59 }
 0x257   :  { %390 = vpush %v300_v60 }
 0x258   :  { %392 = vpush %v308_v61 }
 0x25c   :  { %v421_v62 = vpop.eup %420 }
 0x25d   :  { %v319_v63 = vsel %vm315_vm14, %v421_v62, 0.0 }
 0x25e   :  { %320 = vadd.xlane.f32.xlu2 %v319_v63 }
 0x288   :  { %s391_s3 = spop %390 }
 0x289   :  { %s393_s7 = spop %392 }
 0x28a   :  { %s310_s12 = smul.f32 %s393_s7, %s391_s3 }
 0x2c9   :  { %v318_v0 = vpop.xlane.xlu2 %317 }
 0x2ca   :  { %v322_v1 = vadd.f32 1e-08, %v318_v0 }
 0x2cc   :  { %422 = vlog2.f32 %v322_v1 }
 0x2d1   :  { %v321_v2 = vpop.xlane.xlu2 %320 }
 0x2d2   :  { %v323_v3 = vadd.f32 1e-08, %v321_v2  ;;  %v423_v4 = vpop.eup %422 }
 0x2d3   :  { %v325_v5 = vmul.f32 0.6931472, %v423_v4 }
 0x2d4   :  { %424 = vlog2.f32 %v323_v3 }
 0x2d5   :  { %v329_v8 = vsel %vm328_vm0, %v325_v5, 0.0  ;;  %426 = vrcp.f32 %v524_v11 }
 0x2da   :  { %v425_v6 = vpop.eup %424 }
 0x2db   :  { %v327_v7 = vmul.f32 0.6931472, %v425_v6  ;;  %v427_v12 = vpop.eup %426 }
 0x2dc   :  { %v342_v13 = vmul.f32 16.0, %v427_v12  ;;  %vm346_vm1 = vweird.f32 %v427_v12 }
 0x2dd   :  { %v330_v9 = vsel %vm328_vm0, %v327_v7, 0.0 }
 0x2de   :  { %v331_v10 = vadd.f32 %v330_v9, %v329_v8  ;;  %v343_v14 = vsub.f32 1.0, %v342_v13 }
 0x2e0   :  { %332 = vadd.xlane.f32.xlu1 %v331_v10  ;;  %v344_v18 = vmul.f32 %v427_v12, %v343_v14 }
 0x2e2   :  { %v345_v21 = vadd.f32 %v427_v12, %v344_v18 }
 0x2e4   :  { %v347_v24 = vsel %vm346_vm1, %v427_v12, %v345_v21 }
 0x353   :  { %v333_v15 = vpop.xlane.xlu1 %332 }
 0x354   :  { %v334_v16 = vrot.slane %v333_v15, 4 }
 0x356   :  { %v335_v17 = vadd.f32 %v334_v16, %v333_v15 }
 0x358   :  { %v336_v19 = vrot.slane %v335_v17, 2 }
 0x35a   :  { %v337_v20 = vadd.f32 %v336_v19, %v335_v17 }
 0x35c   :  { %v338_v22 = vrot.slane %v337_v20, 1 }
 0x35e   :  { %v339_v23 = vadd.f32 %v338_v22, %v337_v20 }
 0x360   :  { %394 = vpush %v339_v23 }
 0x361   :  { %396 = vpush %v347_v24 }
 0x391   :  { %s395_s8 = spop %394 }
 0x392   :  { %s397_s13 = spop %396 }
 0x393   :  { %s349_s14 = smul.f32 %s397_s13, %s395_s8 }
 0x395   :  { %s350_s15 = ssub.f32 %s349_s14, %s310_s12 }
 0x397   :  { %352 = sst [smem:[#allocation8]] %s350_s15 }
 0x398   :  { %361 = dma.smem_to_hbm %s525_s16, 16, %s359_s11, [#allocation4]  }
 0x399   :  { %516 = dma.done.wait [#allocation4], 16  }
 0x39a   :  { %517 = vsyncadd [#allocation4], 4294967280 }
 0x39b   :  { %366 = sfence }
 0x39c   :  { %367 = vsyncpa [#allocation3], 1 }
 0x39d   :  { %368 = vsyncpa [#allocation6], 1 }
 0x39e   :  { %369 = vsyncpa [#allocation4], 1 }

</bundles_post_ra>
